<compile_context>
chip_gen: v6e
topology: v6e:2x2x1
jax: 0.10.0
libtpu: 0.0.40
codegen_flags: <defaults>
</compile_context>

<pallas_src>
import numpy as np

import jax
import jax.numpy as jnp
from jax import lax
from jax.experimental import pallas as pl
from jax.experimental.pallas import tpu as pltpu

BN_EPS = 1e-5

# bf16 operands, f32 accumulation on the two wide lane matmuls (review item).
# Flip to jnp.float32 to recover reference-grade numerics (tolerances below
# are selected per dtype).
MXU_DTYPE = jnp.bfloat16


# ---------------------------------------------------------------------------
# Weight-folding helpers (run once at parameter-load time)
# ---------------------------------------------------------------------------
def _kron(a, b):
    """Kronecker product, (m,n) x (p,q) -> (m*p, n*q). Works on traced arrays."""
    a = jnp.asarray(a)
    b = jnp.asarray(b)
    m, n = a.shape
    p, q = b.shape
    return jnp.einsum("mn,pq->mpnq", a, b).reshape(m * p, n * q)


def _tap_matrices(P, H2):
    """Static 0/1 structure matrices (numpy, trace-time constants).

    sel_s2[k][pin, pout] = 1  iff  pin == 2*pout + k - 1   (3x3, stride 2, pad 1)
    sel_s1[k][pin, pout] = 1  iff  pin ==   pout + k - 1   (3x3, stride 1, pad 1)
    up[pin, pout]        = 1  iff  pin == (pout * H2) // P  (nearest upsample)
    Out-of-range taps are simply absent -> exact zero padding.
    """
    sel_s2 = np.zeros((3, P, H2), np.float32)
    sel_s1 = np.zeros((3, P, P), np.float32)
    for k in range(3):
        for po in range(H2):
            pi = 2 * po + k - 1
            if 0 <= pi < P:
                sel_s2[k, pi, po] = 1.0
        for po in range(P):
            pi = po + k - 1
            if 0 <= pi < P:
                sel_s1[k, pi, po] = 1.0
    up = np.zeros((H2, P), np.float32)
    for po in range(P):
        up[(po * H2) // P, po] = 1.0
    return sel_s2, sel_s1, up


# ---------------------------------------------------------------------------
# Pass 1: both conv stages + per-block partial BN sums (weight resident)
# ---------------------------------------------------------------------------
def _dsa_conv_kernel(x_ref, urb_ref, t1w_ref, ab_ref, t2w_ref, zp_ref, st_ref):
    """Layout: rows = (n, h) within the block, lanes = (w, c) = P*C."""
    rb, pc = x_ref.shape
    x = x_ref[...]                                            # (RB, PC) f32

    # Stage 1: attn_conv (dw 3x3 s2 p1 + pw 1x1) fused with the nearest
    # upsample.  One wide lane matmul (single MXU RHS load), then three tiny
    # 0/1 row-gather matmuls for the vertical taps.
    x3 = jnp.dot(x.astype(MXU_DTYPE), t1w_ref[...],
                 preferred_element_type=jnp.float32)          # (RB, 3*PC)
    yu = jnp.zeros((rb, pc), jnp.float32)
    for kh in range(3):
        yu = yu + jnp.dot(urb_ref[kh], x3[:, kh * pc:(kh + 1) * pc],
                          preferred_element_type=jnp.float32)

    # Stage 2: conv (dw 3x3 p1 + pw 1x1), same trick at stride 1.
    y3 = jnp.dot(yu.astype(MXU_DTYPE), t2w_ref[...],
                 preferred_element_type=jnp.float32)          # (RB, 3*PC)
    zp = jnp.zeros((rb, pc), jnp.float32)
    for kh in range(3):
        zp = zp + jnp.dot(ab_ref[kh], y3[:, kh * pc:(kh + 1) * pc],
                          preferred_element_type=jnp.float32)
    zp_ref[...] = zp

    # Partial BN statistics: reduce over rows first (sublane reduce); the
    # channel grouping + mean/var finalization happens in tiny XLA glue.
    rs = jnp.sum(zp, axis=0, keepdims=True)                   # (1, PC)
    rs2 = jnp.sum(zp * zp, axis=0, keepdims=True)             # (1, PC)
    st_ref[...] = jnp.concatenate(
        [rs, rs2, jnp.zeros((6, pc), jnp.float32)], axis=0)   # (8, PC) aligned


# ---------------------------------------------------------------------------
# Pass 2: BatchNorm normalize + sigmoid + residual gate
# ---------------------------------------------------------------------------
def _dsa_norm_kernel(x_ref, zp_ref, scale_ref, shift_ref, out_ref, attn_ref):
    zn = zp_ref[...] * scale_ref[...] + shift_ref[...]
    s = 0.5 * jnp.tanh(0.5 * zn) + 0.5        # exact sigmoid, single EUP op
    attn_ref[...] = s
    out_ref[...] = x_ref[...] * (s + 1.0)     # x*y + x


# ---------------------------------------------------------------------------
# Parameters (deterministic, synthetic -- shapes follow DSA.__init__)
# ---------------------------------------------------------------------------
def init_dsa_params(key, channel):
    k1, k2, k3, k4 = jax.random.split(key, 4)
    return {
        # attn_conv: Conv2d(C, C, 3, s=2, p=1, groups=C) + Conv2d(C, C, 1)
        "attn_dw": 0.2 * jax.random.normal(k1, (channel, 1, 3, 3), jnp.float32),
        "attn_pw": 0.2 * jax.random.normal(k2, (channel, channel, 1, 1), jnp.float32),
        # conv: Conv2d(C, C, 3, p=1, groups=C) + Conv2d(C, C, 1)
        "conv_dw": 0.2 * jax.random.normal(k3, (channel, 1, 3, 3), jnp.float32),
        "conv_pw": 0.2 * jax.random.normal(k4, (channel, channel, 1, 1), jnp.float32),
        # BatchNorm2d default affine init
        "bn_gamma": jnp.ones((channel,), jnp.float32),
        "bn_beta": jnp.zeros((channel,), jnp.float32),
    }


def prepare_dsa_weights(params, patch_size, block_patches=2):
    """Fold conv/upsample weights + gather tables into kernel operands, once."""
    C = params["bn_gamma"].shape[0]
    P = patch_size
    BP = block_patches
    H2 = (P - 1) // 2 + 1                       # spatial size after stride 2
    sel_s2, sel_s1, up = _tap_matrices(P, H2)

    wd1 = params["attn_dw"][:, 0]               # (C, 3, 3)
    wp1 = params["attn_pw"][:, :, 0, 0]         # (Cout, Cin)
    wd2 = params["conv_dw"][:, 0]
    wp2 = params["conv_pw"][:, :, 0, 0]

    # 1x1 pointwise convs as block matrices over the (w, c) lane axis; m1 also
    # carries the nearest W-upsample (H2*C -> P*C lanes).
    m1 = _kron(up, wp1.T)                                   # (H2*C, P*C)
    m2 = _kron(jnp.eye(P, dtype=jnp.float32), wp2.T)        # (P*C,  P*C)

    t1m, t2m = [], []
    for kh in range(3):
        t1 = sum(_kron(sel_s2[kw], jnp.diag(wd1[:, kh, kw])) for kw in range(3))
        t2 = sum(_kron(sel_s1[kw], jnp.diag(wd2[:, kh, kw])) for kw in range(3))
        t1m.append(jnp.dot(t1, m1))   # dw-W taps + stride-2 + pw + W-upsample
        t2m.append(jnp.dot(t2, m2))   # dw-W taps + pw

    # Hstack the per-tap lane matrices: one wide MXU RHS per conv stage.
    t1w = jnp.concatenate(t1m, axis=1).astype(MXU_DTYPE)     # (P*C, 3*P*C)
    t2w = jnp.concatenate(t2m, axis=1).astype(MXU_DTYPE)     # (P*C, 3*P*C)

    # Per-row-block 0/1 gather matrices (a block = block_patches whole patches):
    #   urb[kh]: nearest H-upsample o stride-2 row pick, ab[kh]: stride-1 pick.
    eye_bp = np.eye(BP, dtype=np.float32)
    urb = np.stack([np.kron(eye_bp, up.T @ sel_s2[k].T) for k in range(3)])
    ab = np.stack([np.kron(eye_bp, sel_s1[k].T) for k in range(3)])

    return {
        "t1w": t1w,                                           # (PC, 3*PC) bf16
        "t2w": t2w,                                           # (PC, 3*PC) bf16
        "urb": jnp.asarray(urb),                              # (3, BP*P, BP*P) f32
        "ab": jnp.asarray(ab),                                # (3, BP*P, BP*P) f32
        "gamma": params["bn_gamma"].astype(jnp.float32),      # (C,)
        "beta": params["bn_beta"].astype(jnp.float32),        # (C,)
    }


# ---------------------------------------------------------------------------
# Forward pass (PyTorch-facing NCHW in / NCHW out)
# ---------------------------------------------------------------------------
@jax.jit
def dsa_forward(x, prep):
    """x: (N, C, P, P) float32, NCHW.  Returns (x*y + x, y) in NCHW."""
    N, C, P, Pw = x.shape
    assert P == Pw, "square patches expected"
    PC = P * C
    RB = prep["urb"].shape[1]                 # rows per grid block (= BP * P)
    assert RB % P == 0 and (N * P) % RB == 0, "N must be a multiple of block_patches"
    NB = (N * P) // RB

    # NCHW -> lane-dense (N*P, W*C): 128-wide lanes for the demo shape, so
    # stores are unmasked and the MXU contraction is 128 wide.  (Production:
    # keep the surrounding model in this layout to avoid these transposes.)
    x2 = jnp.transpose(x, (0, 2, 3, 1)).reshape(N * P, PC).astype(jnp.float32)

    # ---- Pass 1: conv stages + partial BN sums.  Weights use constant-index
    # BlockSpecs (VMEM-resident across the whole grid); x / zp blocks pipeline.
    zp, pstats = pl.pallas_call(
        _dsa_conv_kernel,
        grid=(NB,),
        in_specs=[
            pl.BlockSpec((RB, PC), lambda b: (b, 0)),                 # x block
            pl.BlockSpec(prep["urb"].shape, lambda b: (0, 0, 0)),     # resident
            pl.BlockSpec(prep["t1w"].shape, lambda b: (0, 0)),        # resident
            pl.BlockSpec(prep["ab"].shape, lambda b: (0, 0, 0)),      # resident
            pl.BlockSpec(prep["t2w"].shape, lambda b: (0, 0)),        # resident
        ],
        out_specs=(
            pl.BlockSpec((RB, PC), lambda b: (b, 0)),                 # zp block
            pl.BlockSpec((None, 8, PC), lambda b: (b, 0, 0)),         # partial sums
        ),
        out_shape=(jax.ShapeDtypeStruct((N * P, PC), jnp.float32),
                   jax.ShapeDtypeStruct((NB, 8, PC), jnp.float32)),
        compiler_params=pltpu.CompilerParams(
            dimension_semantics=("parallel",)),        # v7x: shard blocks on 2 TCs
    )(x2, prep["urb"], prep["t1w"], prep["ab"], prep["t2w"])

    # ---- Tiny XLA glue: finish training-mode BatchNorm batch statistics.
    # (E[x^2]-mean^2 form; activations are O(1) here so cancellation is benign.)
    sums = jnp.sum(pstats[:, :2, :], axis=0)            # (2, PC)
    sums = sums.reshape(2, P, C).sum(axis=1)             # group lanes by channel
    cnt = float(N * P * P)
    mean = sums[0] / cnt
    var = jnp.maximum(sums[1] / cnt - mean * mean, 0.0)
    scale_c = prep["gamma"] * lax.rsqrt(var + BN_EPS)
    shift_c = prep["beta"] - mean * scale_c
    scale = jnp.tile(scale_c, P).reshape(1, PC)
    shift = jnp.tile(shift_c, P).reshape(1, PC)

    # ---- Pass 2: normalize + sigmoid + residual gate.  x2 / zp are fully
    # consumed before the block store, so they are aliased onto the outputs.
    out2, attn2 = pl.pallas_call(
        _dsa_norm_kernel,
        grid=(NB,),
        in_specs=[
            pl.BlockSpec((RB, PC), lambda b: (b, 0)),     # x block
            pl.BlockSpec((RB, PC), lambda b: (b, 0)),     # zp block
            pl.BlockSpec((1, PC), lambda b: (0, 0)),      # BN scale (resident)
            pl.BlockSpec((1, PC), lambda b: (0, 0)),      # BN shift (resident)
        ],
        out_specs=(
            pl.BlockSpec((RB, PC), lambda b: (b, 0)),
            pl.BlockSpec((RB, PC), lambda b: (b, 0)),
        ),
        out_shape=(jax.ShapeDtypeStruct((N * P, PC), jnp.float32),
                   jax.ShapeDtypeStruct((N * P, PC), jnp.float32)),
        input_output_aliases={0: 0, 1: 1},
        compiler_params=pltpu.CompilerParams(
            dimension_semantics=("parallel",)),
    )(x2, zp, scale, shift)

    out = jnp.transpose(out2.reshape(N, P, P, C), (0, 3, 1, 2))
    attn = jnp.transpose(attn2.reshape(N, P, P, C), (0, 3, 1, 2))
    return out, attn


# ---------------------------------------------------------------------------
# Pure-XLA reference of the same module (for the correctness cross-check)
# ---------------------------------------------------------------------------
def dsa_reference(x, params):
    N, C, P, _ = x.shape
    dn = ("NCHW", "OIHW", "NCHW")
    hi = lax.Precision.HIGHEST
    y = lax.conv_general_dilated(x, params["attn_dw"], (2, 2), ((1, 1), (1, 1)),
                                 dimension_numbers=dn, feature_group_count=C,
                                 precision=hi)
    y = lax.conv_general_dilated(y, params["attn_pw"], (1, 1), ((0, 0), (0, 0)),
                                 dimension_numbers=dn, precision=hi)
    idx = (jnp.arange(P) * y.shape[2]) // P          # nearest: floor(dst*in/out)
    y = y[:, :, idx, :][:, :, :, idx]
    y = lax.conv_general_dilated(y, params["conv_dw"], (1, 1), ((1, 1), (1, 1)),
                                 dimension_numbers=dn, feature_group_count=C,
                                 precision=hi)
    y = lax.conv_general_dilated(y, params["conv_pw"], (1, 1), ((0, 0), (0, 0)),
                                 dimension_numbers=dn, precision=hi)
    mean = jnp.mean(y, axis=(0, 2, 3), keepdims=True)
    var = jnp.mean((y - mean) ** 2, axis=(0, 2, 3), keepdims=True)
    y = (y - mean) * lax.rsqrt(var + BN_EPS)
    y = (y * params["bn_gamma"][None, :, None, None]
         + params["bn_beta"][None, :, None, None])
    s = jax.nn.sigmoid(y)
    return x * s + x, s


if __name__ == "__main__":
    N, C, P = 4, 8, 16            # batch, channels, patch_size  (W*C = 128 lanes)
    BP = 2                        # patches per grid block -> 2 grid steps
    key = jax.random.PRNGKey(0)
    kx, kp = jax.random.split(key)
    x = jax.random.normal(kx, (N, C, P, P), jnp.float32)
    params = init_dsa_params(kp, C)
    prep = prepare_dsa_weights(params, P, block_patches=BP)

    out, attn = dsa_forward(x, prep)
    jax.block_until_ready((out, attn))

    assert out.shape == (N, C, P, P) and attn.shape == (N, C, P, P)
    assert bool(jnp.all(jnp.isfinite(out))) and bool(jnp.all(jnp.isfinite(attn)))
    assert bool(jnp.all((attn > -1e-3) & (attn < 1.0 + 1e-3)))

    # Cross-check the fused kernels against the pure-XLA reference.  bf16 MXU
    # operands (amplified by training-mode BN) need a slightly wider tolerance
    # than the f32 path -- flagged in the review's correctness concerns.
    ref_out, ref_attn = dsa_reference(x, params)
    err_attn = float(jnp.max(jnp.abs(attn - ref_attn)))
    err_out = float(jnp.max(jnp.abs(out - ref_out)))
    tol_attn, tol_out = ((2.5e-2, 1e-1) if MXU_DTYPE == jnp.bfloat16
                         else (1e-2, 5e-2))
    assert err_attn < tol_attn and err_out < tol_out, (err_attn, err_out)

    print("KERNEL_OK")
</pallas_src>

<mosaic_0001>
module attributes {stable_mosaic.version = 11 : i64} {
  func.func @_dsa_conv_kernel(%arg0: i32, %arg1: memref<32x128xf32, #tpu.memory_space<vmem>>, %arg2: memref<3x32x32xf32, #tpu.memory_space<vmem>>, %arg3: memref<128x384xbf16, #tpu.memory_space<vmem>>, %arg4: memref<3x32x32xf32, #tpu.memory_space<vmem>>, %arg5: memref<128x384xbf16, #tpu.memory_space<vmem>>, %arg6: memref<32x128xf32, #tpu.memory_space<vmem>>, %arg7: memref<1x8x128xf32, #tpu.memory_space<vmem>>) attributes {dimension_semantics = [#tpu.dimension_semantics<parallel>], iteration_bounds = array<i64: 2>, scalar_prefetch = 0 : i64, scratch_operands = 0 : i64, tpu.core_type = #tpu.core_type<tc>, window_params = [{transform_indices = @transform_0, window_bounds = array<i64: 32, 128>}, {pipeline_mode = #tpu.pipeline_mode<synchronous>, transform_indices = @transform_1, window_bounds = array<i64: 3, 32, 32>}, {pipeline_mode = #tpu.pipeline_mode<synchronous>, transform_indices = @transform_2, window_bounds = array<i64: 128, 384>}, {pipeline_mode = #tpu.pipeline_mode<synchronous>, transform_indices = @transform_3, window_bounds = array<i64: 3, 32, 32>}, {pipeline_mode = #tpu.pipeline_mode<synchronous>, transform_indices = @transform_4, window_bounds = array<i64: 128, 384>}, {transform_indices = @transform_5, window_bounds = array<i64: 32, 128>}, {transform_indices = @transform_6, window_bounds = array<i64: 1, 8, 128>}]} {
    %c0 = arith.constant 0 : index
    %c0_0 = arith.constant 0 : index
    %0 = vector.load %arg1[%c0, %c0_0] : memref<32x128xf32, #tpu.memory_space<vmem>>, vector<32x128xf32>
    %1 = arith.truncf %0 : vector<32x128xf32> to vector<32x128xbf16>
    %c0_1 = arith.constant 0 : index
    %c0_2 = arith.constant 0 : index
    %2 = vector.load %arg3[%c0_1, %c0_2] : memref<128x384xbf16, #tpu.memory_space<vmem>>, vector<128x384xbf16>
    %cst = arith.constant dense<0.000000e+00> : vector<32x384xf32>
    %3 = tpu.matmul %1, %2, %cst {dimension_numbers = #tpu.dot_dimension_numbers<[1], [0], [0], [1], [0, 0, 1, 1], [], []>} : vector<32x128xbf16>, vector<128x384xbf16>, vector<32x384xf32> -> vector<32x384xf32>
    %cst_3 = arith.constant 0.000000e+00 : f32
    %4 = vector.broadcast %cst_3 : f32 to vector<32x128xf32>
    %c0_4 = arith.constant 0 : index
    %c0_5 = arith.constant 0 : index
    %c0_6 = arith.constant 0 : index
    %5 = vector.load %arg2[%c0_4, %c0_5, %c0_6] : memref<3x32x32xf32, #tpu.memory_space<vmem>>, vector<1x32x32xf32>
    %6 = vector.shape_cast %5 : vector<1x32x32xf32> to vector<32x32xf32>
    %7 = vector.extract_strided_slice %3 {offsets = [0, 0], sizes = [32, 128], strides = [1, 1]} : vector<32x384xf32> to vector<32x128xf32>
    %cst_7 = arith.constant dense<0.000000e+00> : vector<32x128xf32>
    %8 = tpu.matmul %6, %7, %cst_7 {dimension_numbers = #tpu.dot_dimension_numbers<[1], [0], [0], [1], [0, 0, 1, 1], [], []>} : vector<32x32xf32>, vector<32x128xf32>, vector<32x128xf32> -> vector<32x128xf32>
    %9 = arith.addf %4, %8 : vector<32x128xf32>
    %c1 = arith.constant 1 : index
    %c0_8 = arith.constant 0 : index
    %c0_9 = arith.constant 0 : index
    %10 = vector.load %arg2[%c1, %c0_8, %c0_9] : memref<3x32x32xf32, #tpu.memory_space<vmem>>, vector<1x32x32xf32>
    %11 = vector.shape_cast %10 : vector<1x32x32xf32> to vector<32x32xf32>
    %12 = vector.extract_strided_slice %3 {offsets = [0, 128], sizes = [32, 128], strides = [1, 1]} : vector<32x384xf32> to vector<32x128xf32>
    %cst_10 = arith.constant dense<0.000000e+00> : vector<32x128xf32>
    %13 = tpu.matmul %11, %12, %cst_10 {dimension_numbers = #tpu.dot_dimension_numbers<[1], [0], [0], [1], [0, 0, 1, 1], [], []>} : vector<32x32xf32>, vector<32x128xf32>, vector<32x128xf32> -> vector<32x128xf32>
    %14 = arith.addf %9, %13 : vector<32x128xf32>
    %c2 = arith.constant 2 : index
    %c0_11 = arith.constant 0 : index
    %c0_12 = arith.constant 0 : index
    %15 = vector.load %arg2[%c2, %c0_11, %c0_12] : memref<3x32x32xf32, #tpu.memory_space<vmem>>, vector<1x32x32xf32>
    %16 = vector.shape_cast %15 : vector<1x32x32xf32> to vector<32x32xf32>
    %17 = vector.extract_strided_slice %3 {offsets = [0, 256], sizes = [32, 128], strides = [1, 1]} : vector<32x384xf32> to vector<32x128xf32>
    %cst_13 = arith.constant dense<0.000000e+00> : vector<32x128xf32>
    %18 = tpu.matmul %16, %17, %cst_13 {dimension_numbers = #tpu.dot_dimension_numbers<[1], [0], [0], [1], [0, 0, 1, 1], [], []>} : vector<32x32xf32>, vector<32x128xf32>, vector<32x128xf32> -> vector<32x128xf32>
    %19 = arith.addf %14, %18 : vector<32x128xf32>
    %20 = arith.truncf %19 : vector<32x128xf32> to vector<32x128xbf16>
    %c0_14 = arith.constant 0 : index
    %c0_15 = arith.constant 0 : index
    %21 = vector.load %arg5[%c0_14, %c0_15] : memref<128x384xbf16, #tpu.memory_space<vmem>>, vector<128x384xbf16>
    %cst_16 = arith.constant dense<0.000000e+00> : vector<32x384xf32>
    %22 = tpu.matmul %20, %21, %cst_16 {dimension_numbers = #tpu.dot_dimension_numbers<[1], [0], [0], [1], [0, 0, 1, 1], [], []>} : vector<32x128xbf16>, vector<128x384xbf16>, vector<32x384xf32> -> vector<32x384xf32>
    %cst_17 = arith.constant 0.000000e+00 : f32
    %23 = vector.broadcast %cst_17 : f32 to vector<32x128xf32>
    %c0_18 = arith.constant 0 : index
    %c0_19 = arith.constant 0 : index
    %c0_20 = arith.constant 0 : index
    %24 = vector.load %arg4[%c0_18, %c0_19, %c0_20] : memref<3x32x32xf32, #tpu.memory_space<vmem>>, vector<1x32x32xf32>
    %25 = vector.shape_cast %24 : vector<1x32x32xf32> to vector<32x32xf32>
    %26 = vector.extract_strided_slice %22 {offsets = [0, 0], sizes = [32, 128], strides = [1, 1]} : vector<32x384xf32> to vector<32x128xf32>
    %cst_21 = arith.constant dense<0.000000e+00> : vector<32x128xf32>
    %27 = tpu.matmul %25, %26, %cst_21 {dimension_numbers = #tpu.dot_dimension_numbers<[1], [0], [0], [1], [0, 0, 1, 1], [], []>} : vector<32x32xf32>, vector<32x128xf32>, vector<32x128xf32> -> vector<32x128xf32>
    %28 = arith.addf %23, %27 : vector<32x128xf32>
    %c1_22 = arith.constant 1 : index
    %c0_23 = arith.constant 0 : index
    %c0_24 = arith.constant 0 : index
    %29 = vector.load %arg4[%c1_22, %c0_23, %c0_24] : memref<3x32x32xf32, #tpu.memory_space<vmem>>, vector<1x32x32xf32>
    %30 = vector.shape_cast %29 : vector<1x32x32xf32> to vector<32x32xf32>
    %31 = vector.extract_strided_slice %22 {offsets = [0, 128], sizes = [32, 128], strides = [1, 1]} : vector<32x384xf32> to vector<32x128xf32>
    %cst_25 = arith.constant dense<0.000000e+00> : vector<32x128xf32>
    %32 = tpu.matmul %30, %31, %cst_25 {dimension_numbers = #tpu.dot_dimension_numbers<[1], [0], [0], [1], [0, 0, 1, 1], [], []>} : vector<32x32xf32>, vector<32x128xf32>, vector<32x128xf32> -> vector<32x128xf32>
    %33 = arith.addf %28, %32 : vector<32x128xf32>
    %c2_26 = arith.constant 2 : index
    %c0_27 = arith.constant 0 : index
    %c0_28 = arith.constant 0 : index
    %34 = vector.load %arg4[%c2_26, %c0_27, %c0_28] : memref<3x32x32xf32, #tpu.memory_space<vmem>>, vector<1x32x32xf32>
    %35 = vector.shape_cast %34 : vector<1x32x32xf32> to vector<32x32xf32>
    %36 = vector.extract_strided_slice %22 {offsets = [0, 256], sizes = [32, 128], strides = [1, 1]} : vector<32x384xf32> to vector<32x128xf32>
    %cst_29 = arith.constant dense<0.000000e+00> : vector<32x128xf32>
    %37 = tpu.matmul %35, %36, %cst_29 {dimension_numbers = #tpu.dot_dimension_numbers<[1], [0], [0], [1], [0, 0, 1, 1], [], []>} : vector<32x32xf32>, vector<32x128xf32>, vector<32x128xf32> -> vector<32x128xf32>
    %38 = arith.addf %33, %37 : vector<32x128xf32>
    %c0_30 = arith.constant 0 : index
    %c0_31 = arith.constant 0 : index
    %39 = vector.load %arg6[%c0_30, %c0_31] : memref<32x128xf32, #tpu.memory_space<vmem>>, vector<32x128xf32>
    tpu.vector_store %arg6[%c0_30, %c0_31], %38 {strides = array<i32>} : memref<32x128xf32, #tpu.memory_space<vmem>>, vector<32x128xf32>,
    %cst_32 = arith.constant dense<0.000000e+00> : vector<128xf32>
    %40 = vector.multi_reduction <add>, %38, %cst_32 [0] : vector<32x128xf32> to vector<128xf32>
    %41 = vector.shape_cast %40 : vector<128xf32> to vector<1x128xf32>
    %42 = arith.mulf %38, %38 : vector<32x128xf32>
    %cst_33 = arith.constant dense<0.000000e+00> : vector<128xf32>
    %43 = vector.multi_reduction <add>, %42, %cst_33 [0] : vector<32x128xf32> to vector<128xf32>
    %44 = vector.shape_cast %43 : vector<128xf32> to vector<1x128xf32>
    %cst_34 = arith.constant 0.000000e+00 : f32
    %45 = vector.broadcast %cst_34 : f32 to vector<6x128xf32>
    %46 = tpu.concatenate %41, %44, %45 in 0 : vector<1x128xf32>, vector<1x128xf32>, vector<6x128xf32> -> vector<8x128xf32>
    %c0_35 = arith.constant 0 : index
    %c0_36 = arith.constant 0 : index
    %c0_37 = arith.constant 0 : index
    %47 = vector.load %arg7[%c0_35, %c0_36, %c0_37] : memref<1x8x128xf32, #tpu.memory_space<vmem>>, vector<1x8x128xf32>
    %48 = vector.shape_cast %47 : vector<1x8x128xf32> to vector<8x128xf32>
    %49 = vector.shape_cast %46 : vector<8x128xf32> to vector<1x8x128xf32>
    tpu.vector_store %arg7[%c0_35, %c0_36, %c0_37], %49 {strides = array<i32>} : memref<1x8x128xf32, #tpu.memory_space<vmem>>, vector<1x8x128xf32>,
    return
  }
  func.func @transform_0(%arg0: i32) -> (i32, i32) {
    %c0_i32 = arith.constant 0 : i32
    %c0_i32_0 = arith.constant 0 : i32
    return %arg0, %c0_i32 : i32, i32
  }
  func.func @transform_1(%arg0: i32) -> (i32, i32, i32) {
    %c0_i32 = arith.constant 0 : i32
    %c0_i32_0 = arith.constant 0 : i32
    %c0_i32_1 = arith.constant 0 : i32
    %c0_i32_2 = arith.constant 0 : i32
    return %c0_i32, %c0_i32_0, %c0_i32_1 : i32, i32, i32
  }
  func.func @transform_2(%arg0: i32) -> (i32, i32) {
    %c0_i32 = arith.constant 0 : i32
    %c0_i32_0 = arith.constant 0 : i32
    %c0_i32_1 = arith.constant 0 : i32
    return %c0_i32, %c0_i32_0 : i32, i32
  }
  func.func @transform_3(%arg0: i32) -> (i32, i32, i32) {
    %c0_i32 = arith.constant 0 : i32
    %c0_i32_0 = arith.constant 0 : i32
    %c0_i32_1 = arith.constant 0 : i32
    %c0_i32_2 = arith.constant 0 : i32
    return %c0_i32, %c0_i32_0, %c0_i32_1 : i32, i32, i32
  }
  func.func @transform_4(%arg0: i32) -> (i32, i32) {
    %c0_i32 = arith.constant 0 : i32
    %c0_i32_0 = arith.constant 0 : i32
    %c0_i32_1 = arith.constant 0 : i32
    return %c0_i32, %c0_i32_0 : i32, i32
  }
  func.func @transform_5(%arg0: i32) -> (i32, i32) {
    %c0_i32 = arith.constant 0 : i32
    %c0_i32_0 = arith.constant 0 : i32
    return %arg0, %c0_i32 : i32, i32
  }
  func.func @transform_6(%arg0: i32) -> (i32, i32, i32) {
    %c0_i32 = arith.constant 0 : i32
    %c0_i32_0 = arith.constant 0 : i32
    %c0_i32_1 = arith.constant 0 : i32
    return %arg0, %c0_i32, %c0_i32_0 : i32, i32, i32
  }
}

module attributes {stable_mosaic.version = 11 : i64} {
  func.func @_dsa_norm_kernel(%arg0: i32, %arg1: memref<32x128xf32, #tpu.memory_space<vmem>>, %arg2: memref<32x128xf32, #tpu.memory_space<vmem>>, %arg3: memref<1x128xf32, #tpu.memory_space<vmem>>, %arg4: memref<1x128xf32, #tpu.memory_space<vmem>>, %arg5: memref<32x128xf32, #tpu.memory_space<vmem>>, %arg6: memref<32x128xf32, #tpu.memory_space<vmem>>) attributes {dimension_semantics = [#tpu.dimension_semantics<parallel>], iteration_bounds = array<i64: 2>, scalar_prefetch = 0 : i64, scratch_operands = 0 : i64, tpu.core_type = #tpu.core_type<tc>, window_params = [{transform_indices = @transform_0, window_bounds = array<i64: 32, 128>}, {transform_indices = @transform_1, window_bounds = array<i64: 32, 128>}, {pipeline_mode = #tpu.pipeline_mode<synchronous>, transform_indices = @transform_2, window_bounds = array<i64: 1, 128>}, {pipeline_mode = #tpu.pipeline_mode<synchronous>, transform_indices = @transform_3, window_bounds = array<i64: 1, 128>}, {transform_indices = @transform_4, window_bounds = array<i64: 32, 128>}, {transform_indices = @transform_5, window_bounds = array<i64: 32, 128>}]} {
    %c0 = arith.constant 0 : index
    %c0_0 = arith.constant 0 : index
    %0 = vector.load %arg2[%c0, %c0_0] : memref<32x128xf32, #tpu.memory_space<vmem>>, vector<32x128xf32>
    %c0_1 = arith.constant 0 : index
    %c0_2 = arith.constant 0 : index
    %1 = vector.load %arg3[%c0_1, %c0_2] : memref<1x128xf32, #tpu.memory_space<vmem>>, vector<1x128xf32>
    %2 = vector.broadcast %1 : vector<1x128xf32> to vector<32x128xf32>
    %3 = arith.mulf %0, %2 : vector<32x128xf32>
    %c0_3 = arith.constant 0 : index
    %c0_4 = arith.constant 0 : index
    %4 = vector.load %arg4[%c0_3, %c0_4] : memref<1x128xf32, #tpu.memory_space<vmem>>, vector<1x128xf32>
    %5 = vector.broadcast %4 : vector<1x128xf32> to vector<32x128xf32>
    %6 = arith.addf %3, %5 : vector<32x128xf32>
    %cst = arith.constant 5.000000e-01 : f32
    %7 = vector.broadcast %cst : f32 to vector<32x128xf32>
    %8 = arith.mulf %7, %6 : vector<32x128xf32>
    %9 = math.tanh %8 : vector<32x128xf32>
    %cst_5 = arith.constant 5.000000e-01 : f32
    %10 = vector.broadcast %cst_5 : f32 to vector<32x128xf32>
    %11 = arith.mulf %10, %9 : vector<32x128xf32>
    %cst_6 = arith.constant 5.000000e-01 : f32
    %12 = vector.broadcast %cst_6 : f32 to vector<32x128xf32>
    %13 = arith.addf %11, %12 : vector<32x128xf32>
    %c0_7 = arith.constant 0 : index
    %c0_8 = arith.constant 0 : index
    %14 = vector.load %arg6[%c0_7, %c0_8] : memref<32x128xf32, #tpu.memory_space<vmem>>, vector<32x128xf32>
    tpu.vector_store %arg6[%c0_7, %c0_8], %13 {strides = array<i32>} : memref<32x128xf32, #tpu.memory_space<vmem>>, vector<32x128xf32>,
    %c0_9 = arith.constant 0 : index
    %c0_10 = arith.constant 0 : index
    %15 = vector.load %arg1[%c0_9, %c0_10] : memref<32x128xf32, #tpu.memory_space<vmem>>, vector<32x128xf32>
    %cst_11 = arith.constant 1.000000e+00 : f32
    %16 = vector.broadcast %cst_11 : f32 to vector<32x128xf32>
    %17 = arith.addf %13, %16 : vector<32x128xf32>
    %18 = arith.mulf %15, %17 : vector<32x128xf32>
    %c0_12 = arith.constant 0 : index
    %c0_13 = arith.constant 0 : index
    %19 = vector.load %arg5[%c0_12, %c0_13] : memref<32x128xf32, #tpu.memory_space<vmem>>, vector<32x128xf32>
    tpu.vector_store %arg5[%c0_12, %c0_13], %18 {strides = array<i32>} : memref<32x128xf32, #tpu.memory_space<vmem>>, vector<32x128xf32>,
    return
  }
  func.func @transform_0(%arg0: i32) -> (i32, i32) {
    %c0_i32 = arith.constant 0 : i32
    %c0_i32_0 = arith.constant 0 : i32
    return %arg0, %c0_i32 : i32, i32
  }
  func.func @transform_1(%arg0: i32) -> (i32, i32) {
    %c0_i32 = arith.constant 0 : i32
    %c0_i32_0 = arith.constant 0 : i32
    return %arg0, %c0_i32 : i32, i32
  }
  func.func @transform_2(%arg0: i32) -> (i32, i32) {
    %c0_i32 = arith.constant 0 : i32
    %c0_i32_0 = arith.constant 0 : i32
    %c0_i32_1 = arith.constant 0 : i32
    return %c0_i32, %c0_i32_0 : i32, i32
  }
  func.func @transform_3(%arg0: i32) -> (i32, i32) {
    %c0_i32 = arith.constant 0 : i32
    %c0_i32_0 = arith.constant 0 : i32
    %c0_i32_1 = arith.constant 0 : i32
    return %c0_i32, %c0_i32_0 : i32, i32
  }
  func.func @transform_4(%arg0: i32) -> (i32, i32) {
    %c0_i32 = arith.constant 0 : i32
    %c0_i32_0 = arith.constant 0 : i32
    return %arg0, %c0_i32 : i32, i32
  }
  func.func @transform_5(%arg0: i32) -> (i32, i32) {
    %c0_i32 = arith.constant 0 : i32
    %c0_i32_0 = arith.constant 0 : i32
    return %arg0, %c0_i32 : i32, i32
  }
}

</mosaic_0001>

<bundles_post_ra>
// kernel: tile.18
= control target key start
LH: loop header
LB: loop body
LE: loop exit
PB: predicated region body
PF: predicated region fallthrough
CT: control target
= control target key end

     0   :  { %s28_s0 = inlined_call_operand.vmem [shape: f32[8], index: 0, kind: input, shape index: {}]   ;;  %s29_s1 = inlined_call_operand.vmem [shape: f32[16,8], index: 1, kind: output, shape index: {}]  }
   0x1   :  { %v4_v0 = vld [vmem:[%s28_s0] ss:$0 sm:$0xff] }
   0x2   :  { %5 = vst [vmem:[%s29_s1] sm:$0xff] %v4_v0  ;;  %8 = vst [vmem:[%s29_s1 + $0x8] sm:$0xff] %v4_v0 }

// kernel: tile.19
= control target key start
LH: loop header
LB: loop body
LE: loop exit
PB: predicated region body
PF: predicated region fallthrough
CT: control target
= control target key end

     0   :  { %s133_s10 = smov 120   ;;  %s134_s11 = smov 104   ;;  %vm3_vm0 = vcmask 64512   ;;  %vm9_vm1 = vcmask 1048512   ;;  %vm15_vm2 = vcmask 982912   ;;  %vm21_vm3 = vcmask 917312   ;;  %s209_s0 = inlined_call_operand.vmem [shape: f32[16,8], index: 0, kind: input, shape index: {}]   ;;  %s210_s1 = inlined_call_operand.vmem [shape: f32[1,128], index: 1, kind: output, shape index: {}]  }
   0x1   :  { %v103_v0 = vld [vmem:[%s209_s0 + $0xf] sm:$0x1]   ;;  %v105_v1 = vld [vmem:[%s209_s0 + $0xd] sm:$0x1]   ;;  %v104_v2 = vld [vmem:[%s209_s0 + $0xe] sm:$0x1]  }
   0x2   :  { %7 = vrot.lane.b32.xlu0 %v103_v0, %s133_s10  ;;  %19 = vrot.lane.b32.xlu1 %v105_v1, %s134_s11  ;;  %v106_v3 = vld [vmem:[%s209_s0 + $0xc] sm:$0x1]   ;;  %s135_s16 = smov 112   ;;  %s136_s17 = smov 96   ;;  %v107_v4 = vld [vmem:[%s209_s0 + $0xb] sm:$0x1]  }
   0x3   :  { %v108_v5 = vld [vmem:[%s209_s0 + $0xa] sm:$0x1]   ;;  %v2_v6 = vld [vmem:[%s209_s0] sm:$0x1]   ;;  %s137_s24 = smov 88   ;;  %s138_s25 = smov 80  }
   0x4   :  { %4 = vst.msk [vmem:[#allocation0] sm:$0x1] %vm3_vm0, %v2_v6   ;;  %v109_v7 = vld [vmem:[%s209_s0 + $0x9] sm:$0x1]   ;;  %v110_v8 = vld [vmem:[%s209_s0 + $0x8] sm:$0x1]  }
   0x5   :  { %s139_s30 = smov 72   ;;  %s140_s2 = smov 64   ;;  %v111_v9 = vld [vmem:[%s209_s0 + $0x7] sm:$0x1]   ;;  %v112_v10 = vld [vmem:[%s209_s0 + $0x6] sm:$0x1]  }
   0x6   :  { %13 = vrot.lane.b32.xlu0 %v104_v2, %s135_s16  ;;  %25 = vrot.lane.b32.xlu1 %v106_v3, %s136_s17  ;;  %s141_s7 = smov 56   ;;  %s142_s8 = smov 48   ;;  %v113_v11 = vld [vmem:[%s209_s0 + $0x5] sm:$0x1]   ;;  %v114_v12 = vld [vmem:[%s209_s0 + $0x4] sm:$0x1]  }
   0x7   :  { %s143_s13 = smov 40   ;;  %s144_s14 = smov 32   ;;  %v115_v13 = vld [vmem:[%s209_s0 + $0x3] sm:$0x1]   ;;  %v116_v14 = vld [vmem:[%s209_s0 + $0x2] sm:$0x1]  }
   0x8   :  { %s145_s19 = smov 24   ;;  %s146_s20 = smov 16   ;;  %v117_v15 = vld [vmem:[%s209_s0 + $0x1] sm:$0x1]   ;;  %vm27_vm4 = vcmask 851712   ;;  %vm33_vm5 = vcmask 786112  }
   0x9   :  { %s147_s0 = smov 8   ;;  %vm39_vm6 = vcmask 720512   ;;  %vm45_vm7 = vcmask 654912   ;;  %vm51_vm8 = vcmask 589312   ;;  %vm57_vm9 = vcmask 523712  }
   0xa   :  { %31 = vrot.lane.b32.xlu0 %v107_v4, %s137_s24  ;;  %37 = vrot.lane.b32.xlu1 %v108_v5, %s138_s25  ;;  %vm63_vm10 = vcmask 458112   ;;  %vm69_vm11 = vcmask 392512   ;;  %vm75_vm12 = vcmask 326912   ;;  %vm81_vm13 = vcmask 261312  }
   0xb   :  { %vm87_vm14 = vcmask 195712   ;;  %vm93_vm15 = vcmask 130112  }
   0xe   :  { %43 = vrot.lane.b32.xlu0 %v109_v7, %s139_s30  ;;  %49 = vrot.lane.b32.xlu1 %v110_v8, %s140_s2 }
  0x12   :  { %55 = vrot.lane.b32.xlu0 %v111_v9, %s141_s7  ;;  %61 = vrot.lane.b32.xlu1 %v112_v10, %s142_s8 }
  0x16   :  { %67 = vrot.lane.b32.xlu0 %v113_v11, %s143_s13  ;;  %73 = vrot.lane.b32.xlu1 %v114_v12, %s144_s14 }
  0x1a   :  { %79 = vrot.lane.b32.xlu0 %v115_v13, %s145_s19  ;;  %85 = vrot.lane.b32.xlu1 %v116_v14, %s146_s20 }
  0x1e   :  { %91 = vrot.lane.b32.xlu0 %v117_v15, %s147_s0 }
  0x74   :  { %v8_v16 = vpop.permute.xlu0 %7   ;;  %v20_v17 = vpop.permute.xlu1 %19  }
  0x75   :  { %10 = vst.msk [vmem:[#allocation0] sm:$0x1] %vm9_vm1, %v8_v16  }
  0x78   :  { %v14_v18 = vpop.permute.xlu0 %13   ;;  %v26_v19 = vpop.permute.xlu1 %25  }
  0x79   :  { %16 = vst.msk [vmem:[#allocation0] sm:$0x1] %vm15_vm2, %v14_v18  }
  0x7a   :  { %22 = vst.msk [vmem:[#allocation0] sm:$0x1] %vm21_vm3, %v20_v17  }
  0x7b   :  { %28 = vst.msk [vmem:[#allocation0] sm:$0x1] %vm27_vm4, %v26_v19  }
  0x7c   :  { %v32_v20 = vpop.permute.xlu0 %31   ;;  %v38_v21 = vpop.permute.xlu1 %37  }
  0x7d   :  { %34 = vst.msk [vmem:[#allocation0] sm:$0x1] %vm33_vm5, %v32_v20  }
  0x7e   :  { %40 = vst.msk [vmem:[#allocation0] sm:$0x1] %vm39_vm6, %v38_v21  }
  0x80   :  { %v44_v22 = vpop.permute.xlu0 %43   ;;  %v50_v23 = vpop.permute.xlu1 %49  }
  0x81   :  { %46 = vst.msk [vmem:[#allocation0] sm:$0x1] %vm45_vm7, %v44_v22  }
  0x82   :  { %52 = vst.msk [vmem:[#allocation0] sm:$0x1] %vm51_vm8, %v50_v23  }
  0x84   :  { %v56_v24 = vpop.permute.xlu0 %55   ;;  %v62_v25 = vpop.permute.xlu1 %61  }
  0x85   :  { %58 = vst.msk [vmem:[#allocation0] sm:$0x1] %vm57_vm9, %v56_v24  }
  0x86   :  { %64 = vst.msk [vmem:[#allocation0] sm:$0x1] %vm63_vm10, %v62_v25  }
  0x88   :  { %v68_v26 = vpop.permute.xlu0 %67   ;;  %v74_v27 = vpop.permute.xlu1 %73  }
  0x89   :  { %70 = vst.msk [vmem:[#allocation0] sm:$0x1] %vm69_vm11, %v68_v26  }
  0x8a   :  { %76 = vst.msk [vmem:[#allocation0] sm:$0x1] %vm75_vm12, %v74_v27  }
  0x8c   :  { %v80_v28 = vpop.permute.xlu0 %79   ;;  %v86_v29 = vpop.permute.xlu1 %85  }
  0x8d   :  { %82 = vst.msk [vmem:[#allocation0] sm:$0x1] %vm81_vm13, %v80_v28  }
  0x8e   :  { %88 = vst.msk [vmem:[#allocation0] sm:$0x1] %vm87_vm14, %v86_v29  }
  0x90   :  { %v92_v30 = vpop.permute.xlu0 %91  }
  0x91   :  { %94 = vst.msk [vmem:[#allocation0] sm:$0x1] %vm93_vm15, %v92_v30  }
  0x98   :  { %v99_v31 = vld [vmem:[#allocation0] sm:$0x1] }
  0x99   :  { %102 = vst [vmem:[%s210_s1] sm:$0x1] %v99_v31 }

// kernel: dsa_forward.3
= control target key start
LH: loop header
LB: loop body
LE: loop exit
PB: predicated region body
PF: predicated region fallthrough
CT: control target
= control target key end

     0   :  { %s499_s18 = smov 0   ;;  %s534_s0 = inlined_call_operand.vmem [shape: f32[64,128], index: 0, kind: input, shape index: {}, may-alias: {0,4}]   ;;  %s535_s1 = inlined_call_operand.vmem [shape: f32[64,128], index: 1, kind: input, shape index: {}, may-alias: {1,5}]   ;;  %s536_s2 = inlined_call_operand.vmem [shape: f32[1,128], index: 2, kind: input, shape index: {}]   ;;  %s537_s3 = inlined_call_operand.vmem [shape: f32[1,128], index: 3, kind: input, shape index: {}]   ;;  %s538_s4 = inlined_call_operand.vmem [shape: f32[64,128], index: 4, kind: output, shape index: {0}, may-alias: {0,4}]   ;;  %s539_s5 = inlined_call_operand.vmem [shape: f32[64,128], index: 5, kind: output, shape index: {1}, may-alias: {1,5}]  }
   0x1 LB: > { %s428_s19 = sadd.s32 4294967295, %s467_s18   ;;  %p432_p0 = scmp.ge.s32.totalorder %s467_s18, 1  ;;  %s467_s18 = sphi %s499_s18, %s16_s18  }
   0x2   : > { %p202_p1 = scmp.lt.s32.totalorder %s467_s18, 3 }
   0x4   : > { %p203_p2 = pnand %p432_p0, %p202_p1 }
   0x5   : > { %s433_s20 = sshll.u32 (!%p203_p2), %s428_s19, 2 }
   0x6   : > { %206 = sbr.rel (%p203_p2) target bundleno = 47 (0x2f), region = 36  ;;  %p241_p3 = scmp.lt.s32.totalorder (!%p203_p2), %s433_s20, 7 }
   0xb   : > { %s541_s20 = smov (!%p241_p3, %s433_s20), 7  ;;  %v441_v0 = vld [vmem:[%s536_s2] ss:$0 sm:$0xff] }
   0xc   : > { %s507_s21 = sshll.u32 %s541_s20, 3  ;;  %v442_v1 = vld [vmem:[%s537_s3] ss:$0 sm:$0xff] }
   0xd   : > { %s250_s26 = scalar_lea.vmem %s535_s1, %s507_s21  ;;  %s244_s6 = scalar_lea.vmem %s534_s0, %s507_s21 }
   0xe   : > { %v264_v2 = vld [vmem:[%s250_s26] sm:$0xff]  ;;  %v265_v3 = vld [vmem:[%s250_s26 + $0x8] sm:$0xff]  ;;  %v266_v4 = vld [vmem:[%s250_s26 + $0x10] sm:$0xff]  ;;  %s262_s9 = scalar_lea.vmem %s539_s5, %s507_s21  ;;  %s256_s12 = scalar_lea.vmem %s538_s4, %s507_s21 }
   0xf   : > { %v267_v5 = vld [vmem:[%s250_s26 + $0x18] sm:$0xff]  ;;  %v275_v6 = vmul.f32 %v441_v0, %v264_v2  ;;  %v276_v7 = vmul.f32 %v441_v0, %v265_v3  ;;  %v277_v8 = vmul.f32 %v441_v0, %v266_v4  ;;  %v310_v27 = vld [vmem:[%s244_s6] sm:$0xff]  ;;  %v311_v29 = vld [vmem:[%s244_s6 + $0x8] sm:$0xff] }
  0x10   : > { %v278_v9 = vmul.f32 %v441_v0, %v267_v5  ;;  %v312_v32 = vld [vmem:[%s244_s6 + $0x10] sm:$0xff]  ;;  %v313_v33 = vld [vmem:[%s244_s6 + $0x18] sm:$0xff] }
  0x11   : > { %v286_v10 = vadd.f32 %v442_v1, %v275_v6  ;;  %v287_v11 = vadd.f32 %v442_v1, %v276_v7  ;;  %v288_v12 = vadd.f32 %v442_v1, %v277_v8 }
  0x12   : > { %v289_v13 = vadd.f32 %v442_v1, %v278_v9 }
  0x13   : > { %v290_v14 = vmul.f32 0.5, %v286_v10  ;;  %v291_v15 = vmul.f32 0.5, %v287_v11  ;;  %v292_v16 = vmul.f32 0.5, %v288_v12 }
  0x14   : > { %v293_v17 = vmul.f32 0.5, %v289_v13 }
  0x15   : > { %453 = vtanh.f32 %v290_v14 }
  0x16   : > { %455 = vtanh.f32 %v291_v15 }
  0x17   : > { %457 = vtanh.f32 %v292_v16 }
  0x18   : > { %459 = vtanh.f32 %v293_v17 }
  0x22   : > { %v454_v18 = vpop.eup %453 }
  0x23   : > { %v456_v19 = vpop.eup %455  ;;  %v298_v20 = vmul.f32 0.5, %v454_v18 }
  0x24   : > { %v458_v21 = vpop.eup %457  ;;  %v299_v22 = vmul.f32 0.5, %v456_v19 }
  0x25   : > { %v460_v23 = vpop.eup %459  ;;  %v302_v24 = vadd.f32 0.5, %v298_v20  ;;  %v300_v25 = vmul.f32 0.5, %v458_v21 }
  0x26   : > { %v303_v26 = vadd.f32 0.5, %v299_v22  ;;  %v301_v28 = vmul.f32 0.5, %v460_v23 }
  0x27   : > { %306 = vst [vmem:[%s262_s9] sm:$0xff] %v302_v24  ;;  %v314_v30 = vadd.f32 1.0, %v302_v24  ;;  %v304_v31 = vadd.f32 0.5, %v300_v25 }
  0x28   : > { %v315_v34 = vadd.f32 1.0, %v303_v26  ;;  %307 = vst [vmem:[%s262_s9 + $0x8] sm:$0xff] %v303_v26  ;;  %v305_v35 = vadd.f32 0.5, %v301_v28 }
  0x29   : > { %v318_v36 = vmul.f32 %v314_v30, %v310_v27  ;;  %308 = vst [vmem:[%s262_s9 + $0x10] sm:$0xff] %v304_v31  ;;  %v316_v37 = vadd.f32 1.0, %v304_v31 }
  0x2a   : > { %v319_v38 = vmul.f32 %v315_v34, %v311_v29  ;;  %309 = vst [vmem:[%s262_s9 + $0x18] sm:$0xff] %v305_v35  ;;  %v317_v39 = vadd.f32 1.0, %v305_v35 }
  0x2b   : > { %322 = vst [vmem:[%s256_s12] sm:$0xff] %v318_v36  ;;  %v320_v40 = vmul.f32 %v316_v37, %v312_v32 }
  0x2c   : > { %323 = vst [vmem:[%s256_s12 + $0x8] sm:$0xff] %v319_v38  ;;  %v321_v41 = vmul.f32 %v317_v39, %v313_v33 }
  0x2d   : > { %324 = vst [vmem:[%s256_s12 + $0x10] sm:$0xff] %v320_v40 }
  0x2e   : > { %325 = vst [vmem:[%s256_s12 + $0x18] sm:$0xff] %v321_v41 }
  0x2f PF: > { %s16_s18 = sadd.s32 1, %s467_s18  }
  0x30   : > { %p13_p4 = scmp.ge.s32.totalorder %s16_s18, 4  }
  0x32   :  { %15 = sbr.rel (!%p13_p4) target bundleno = 1 (0x1), region = 81 }

// kernel: dsa_forward.2
= control target key start
LH: loop header
LB: loop body
LE: loop exit
PB: predicated region body
PF: predicated region fallthrough
CT: control target
= control target key end

     0   :  { %s1945_s21 = smov 0   ;;  %s2227_s0 = inlined_call_operand.vmem [shape: f32[64,128], index: 0, kind: input, shape index: {}]   ;;  %s2228_s1 = inlined_call_operand.vmem [shape: f32[3,32,32], index: 1, kind: input, shape index: {}]   ;;  %s2229_s2 = inlined_call_operand.vmem [shape: bf16[128,384], index: 2, kind: input, shape index: {}]   ;;  %s2230_s3 = inlined_call_operand.vmem [shape: f32[3,32,32], index: 3, kind: input, shape index: {}]   ;;  %s2231_s4 = inlined_call_operand.vmem [shape: bf16[128,384], index: 4, kind: input, shape index: {}]   ;;  %s2232_s5 = inlined_call_operand.vmem [shape: f32[64,128], index: 5, kind: output, shape index: {0}]   ;;  %s2233_s6 = inlined_call_operand.vmem [shape: f32[2,8,128], index: 6, kind: output, shape index: {1}]  }
   0x1 LB: > { %s1951_s22 = sadd.s32 4294967295, %s1907_s21   ;;  %p1540_p0 = scmp.ge.s32.totalorder %s1907_s21, 1  ;;  %s1907_s21 = sphi %s1945_s21, %s17_s21  }
   0x2   : > { %p216_p1 = scmp.lt.s32.totalorder %s1907_s21, 3 }
   0x4   : > { %p217_p2 = pnand %p1540_p0, %p216_p1 }
   0x5   : > { %s1541_s25 = sshll.u32 (!%p217_p2), %s1951_s22, 2  ;;  %p262_p4 = scmp.lt.s32.totalorder (!%p217_p2), %s1951_s22, 1 }
   0x6   : > { %220 = sbr.rel (%p217_p2) target bundleno = 911 (0x38f), region = 40  ;;  %p251_p3 = scmp.lt.s32.totalorder (!%p217_p2), %s1541_s25, 7 }
   0xb   : > { %v1837_v0 = vld [vmem:[%s2229_s2 + $0xac] ss:$12 sps:$4 sm:$0xff]   ;;  %v1839_v1 = vld [vmem:[%s2229_s2 + $0xa8] ss:$12 sps:$4 sm:$0xff]   ;;  %v1909_v2 = vmov 0   ;;  %s2235_s25 = smov (!%p251_p3, %s1541_s25), 7 }
   0xc   : > { %465 = vmatprep.mubr.bf16.mxu0 %v1909_v2  ;;  %433 = vmatprep.subr.bf16.mxu0 %v1837_v0  ;;  %v1840_v3 = vld [vmem:[%s2229_s2 + $0x94] ss:$12 sps:$4 sm:$0xff]   ;;  %v1842_v4 = vld [vmem:[%s2229_s2 + $0x90] ss:$12 sps:$4 sm:$0xff]   ;;  %v1845_v7 = vld [vmem:[%s2229_s2 + $0x78] ss:$12 sps:$4 sm:$0xff]  }
   0xd   : > { %434 = vmatpush1.bf16.msra.mxu0 %v1839_v1  ;;  %v1843_v5 = vld [vmem:[%s2229_s2 + $0x7c] ss:$12 sps:$4 sm:$0xff]   ;;  %v1846_v8 = vld [vmem:[%s2229_s2 + $0x64] ss:$12 sps:$4 sm:$0xff]   ;;  %s1542_s18 = sshll.u32 %s2235_s25, 3  ;;  %vm544_vm0 = vcmask 261120  }
   0xe   : > { %435 = vmatprep.subr.bf16.mxu0 %v1840_v3  ;;  %v1848_v6 = vld [vmem:[%s2229_s2 + $0xb0] ss:$12 sps:$4 sm:$0xff]   ;;  %v1852_v9 = vld [vmem:[%s2229_s2 + $0x98] ss:$12 sps:$4 sm:$0xff]   ;;  %v1856_v10 = vld [vmem:[%s2229_s2 + $0x80] ss:$12 sps:$4 sm:$0xff]   ;;  %s2001_s30 = scalar_lea.vmem %s2227_s0, %s1542_s18  ;;  %s260_s10 = scalar_lea.vmem %s2232_s5, %s1542_s18 }
   0xf   : > { %1704 = vmatprep.subr.bf16.mxu1 %v1848_v6  ;;  %v1849_v11 = vld [vmem:[%s2229_s2 + $0x60] ss:$12 sps:$4 sm:$0xff]   ;;  %v1860_v13 = vld [vmem:[%s2229_s2 + $0x68] ss:$12 sps:$4 sm:$0xff]   ;;  %v1864_v18 = vld [vmem:[%s2229_s2 + $0x50] ss:$12 sps:$4 sm:$0xff]  }
  0x10   : > { %1705 = vmatpush3.bf16.msra.mxu1 %v1848_v6  ;;  %v1850_v12 = vld [vmem:[%s2229_s2 + $0x4c] ss:$12 sps:$4 sm:$0xff]   ;;  %v1853_v14 = vld [vmem:[%s2229_s2 + $0x48] ss:$12 sps:$4 sm:$0xff]   ;;  %v267_v16 = vld [vmem:[%s2001_s30] sm:$0xff]  ;;  %s2237_s22 = smov (!%p262_p4, %s1951_s22), 1 }
  0x11   : > { %436 = vmatpush1.bf16.msra.mxu0 %v1842_v4  ;;  %1706 = vmatprep.subr.bf16.mxu1 %v1852_v9  ;;  %v1854_v15 = vld [vmem:[%s2229_s2 + $0x34] ss:$12 sps:$4 sm:$0xff]   ;;  %v268_v17 = vld [vmem:[%s2001_s30 + $0x8] sm:$0xff]  ;;  %v1857_v20 = vld [vmem:[%s2229_s2 + $0x30] ss:$12 sps:$4 sm:$0xff]   ;;  %s1545_s25 = sshll.u32 %s2237_s22, 3 }
  0x12   : > { %437 = vmatprep.subr.bf16.mxu0 %v1843_v5  ;;  %v271_v19 = vpack.c.bf16 %v268_v17, %v267_v16  ;;  %v1858_v21 = vld [vmem:[%s2229_s2 + $0x1c] ss:$12 sps:$4 sm:$0xff]   ;;  %v1866_v22 = vld [vmem:[%s2229_s2 + $0x38] ss:$12 sps:$4 sm:$0xff]   ;;  %v1867_v25 = vld [vmem:[%s2229_s2 + $0x20] ss:$12 sps:$4 sm:$0xff]   ;;  %s265_s12 = scalar_lea.vmem %s2233_s6, %s1545_s25 }
  0x13   : > { %v1861_v23 = vld [vmem:[%s2229_s2 + $0x18] ss:$12 sps:$4 sm:$0xff]   ;;  %v1865_v26 = vld [vmem:[%s2229_s2] ss:$12 sps:$4 sm:$0xff]   ;;  %v1868_v27 = vld [vmem:[%s2229_s2 + $0x8] ss:$12 sps:$4 sm:$0xff]  }
  0x14   : > { %1707 = vmatpush3.bf16.msra.mxu1 %v1852_v9  ;;  %1720 = vmatprep.mubr.bf16.mxu1 %v271_v19  ;;  %v1862_v24 = vld [vmem:[%s2229_s2 + $0x4] ss:$12 sps:$4 sm:$0xff]   ;;  %v270_v29 = vld [vmem:[%s2001_s30 + $0x18] sm:$0xff]  ;;  %v536_v43 = vld [vmem:[%s2228_s1 + $0x8] sm:$0xff]  ;;  %vm1444_vm1 = vcmask 1040384   ;;  %vm1446_vm2 = vcmask 1041408  }
  0x15   : > { %438 = vmatpush1.bf16.msra.mxu0 %v1845_v7  ;;  %1708 = vmatprep.subr.bf16.mxu1 %v1856_v10  ;;  %v269_v28 = vld [vmem:[%s2001_s30 + $0x10] sm:$0xff]  ;;  %v1570_v31 = vld [vmem:[%s2228_s1 + $0x20] sm:$0xff]  ;;  %v1571_v45 = vld [vmem:[%s2228_s1 + $0x28] sm:$0xff] }
  0x16   : > { %439 = vmatprep.subr.bf16.mxu0 %v1846_v8  ;;  %v272_v30 = vpack.c.bf16 %v270_v29, %v269_v28  ;;  %v535_v32 = vld [vmem:[%s2228_s1] sm:$0xff]  ;;  %v537_v44 = vld [vmem:[%s2228_s1 + $0x10] sm:$0xff]  ;;  %v538_v48 = vld [vmem:[%s2228_s1 + $0x18] sm:$0xff] }
  0x17   : > { %v1572_v46 = vld [vmem:[%s2228_s1 + $0x30] sm:$0xff]  ;;  %v1871_v49 = vld [vmem:[%s2231_s4 + $0xac] ss:$12 sps:$4 sm:$0xff]   ;;  %v1582_v51 = vld [vmem:[%s2228_s1 + $0x40] sm:$0xff] }
  0x18   : > { %1709 = vmatpush3.bf16.msra.mxu1 %v1856_v10  ;;  %v1573_v50 = vld [vmem:[%s2228_s1 + $0x38] sm:$0xff]  ;;  %v1869_v52 = vld [vmem:[%s2231_s4 + $0xa8] ss:$12 sps:$4 sm:$0xff]   ;;  %v1883_v63 = vld [vmem:[%s2231_s4 + $0x80] ss:$12 sps:$4 sm:$0xff]  }
  0x19   : > { %440 = vmatpush1.bf16.msra.mxu0 %v1849_v11  ;;  %1710 = vmatprep.subr.bf16.mxu1 %v1860_v13  ;;  %v1874_v54 = vld [vmem:[%s2231_s4 + $0x94] ss:$12 sps:$4 sm:$0xff]   ;;  %v1875_v55 = vld [vmem:[%s2231_s4 + $0xb0] ss:$12 sps:$4 sm:$0xff]   ;;  %v1583_v56 = vld [vmem:[%s2228_s1 + $0x48] sm:$0xff] }
  0x1a   : > { %441 = vmatprep.subr.bf16.mxu0 %v1850_v12  ;;  %v1584_v57 = vld [vmem:[%s2228_s1 + $0x50] sm:$0xff]  ;;  %v1879_v59 = vld [vmem:[%s2231_s4 + $0x98] ss:$12 sps:$4 sm:$0xff]   ;;  %v1878_v60 = vld [vmem:[%s2231_s4 + $0x7c] ss:$12 sps:$4 sm:$0xff]  }
  0x1b   : > { %v1872_v58 = vld [vmem:[%s2231_s4 + $0x90] ss:$12 sps:$4 sm:$0xff]   ;;  %v1876_v62 = vld [vmem:[%s2231_s4 + $0x78] ss:$12 sps:$4 sm:$0xff]   ;;  %v1880_v1 = vld [vmem:[%s2231_s4 + $0x60] ss:$12 sps:$4 sm:$0xff]  }
  0x1c   : > { %1711 = vmatpush3.bf16.msra.mxu1 %v1860_v13  ;;  %v1585_v61 = vld [vmem:[%s2228_s1 + $0x58] sm:$0xff]  ;;  %v1882_v0 = vld [vmem:[%s2231_s4 + $0x64] ss:$12 sps:$4 sm:$0xff]   ;;  %v1887_v3 = vld [vmem:[%s2231_s4 + $0x68] ss:$12 sps:$4 sm:$0xff]  }
  0x1d   : > { %442 = vmatpush1.bf16.msra.mxu0 %v1853_v14  ;;  %1712 = vmatprep.subr.bf16.mxu1 %v1864_v18  ;;  %v1886_v4 = vld [vmem:[%s2231_s4 + $0x4c] ss:$12 sps:$4 sm:$0xff]   ;;  %v1884_v5 = vld [vmem:[%s2231_s4 + $0x48] ss:$12 sps:$4 sm:$0xff]   ;;  %v1891_v7 = vld [vmem:[%s2231_s4 + $0x50] ss:$12 sps:$4 sm:$0xff]  }
  0x1e   : > { %443 = vmatprep.subr.bf16.mxu0 %v1854_v15  ;;  %v1890_v6 = vld [vmem:[%s2231_s4 + $0x34] ss:$12 sps:$4 sm:$0xff]   ;;  %v1888_v8 = vld [vmem:[%s2231_s4 + $0x30] ss:$12 sps:$4 sm:$0xff]   ;;  %v1895_v10 = vld [vmem:[%s2231_s4 + $0x38] ss:$12 sps:$4 sm:$0xff]  }
  0x1f   : > { %v1894_v9 = vld [vmem:[%s2231_s4 + $0x1c] ss:$12 sps:$4 sm:$0xff]   ;;  %v1892_v11 = vld [vmem:[%s2231_s4 + $0x18] ss:$12 sps:$4 sm:$0xff]   ;;  %v1899_v13 = vld [vmem:[%s2231_s4 + $0x20] ss:$12 sps:$4 sm:$0xff]  }
  0x20   : > { %1713 = vmatpush3.bf16.msra.mxu1 %v1864_v18  ;;  %v1898_v12 = vld [vmem:[%s2231_s4 + $0x4] ss:$12 sps:$4 sm:$0xff]   ;;  %v1896_v14 = vld [vmem:[%s2231_s4] ss:$12 sps:$4 sm:$0xff]   ;;  %v1900_v15 = vld [vmem:[%s2231_s4 + $0x8] ss:$12 sps:$4 sm:$0xff]  }
  0x21   : > { %444 = vmatpush1.bf16.msra.mxu0 %v1857_v20  ;;  %1714 = vmatprep.subr.bf16.mxu1 %v1866_v22 }
  0x22   : > { %445 = vmatprep.subr.bf16.mxu0 %v1858_v21 }
  0x24   : > { %1715 = vmatpush3.bf16.msra.mxu1 %v1866_v22 }
  0x25   : > { %446 = vmatpush1.bf16.msra.mxu0 %v1861_v23  ;;  %1716 = vmatprep.subr.bf16.mxu1 %v1867_v25 }
  0x26   : > { %447 = vmatprep.subr.bf16.mxu0 %v1862_v24 }
  0x28   : > { %1717 = vmatpush3.bf16.msra.mxu1 %v1867_v25 }
  0x29   : > { %448 = vmatpush1.bf16.msra.mxu0 %v1865_v26  ;;  %1718 = vmatprep.subr.bf16.mxu1 %v1868_v27 }
  0x2c   : > { %466 = vmatmul.mubr.bf16.vlgmr.msra.gmra.mxu0 %v271_v19  ;;  %1719 = vmatpush3.bf16.msra.mxu1 %v1868_v27 }
  0x2d   : > { %475 = vmatprep.mubr.bf16.mxu0 %v1909_v2 }
  0x2f   : > { %1721 = vmatmul.mubr.bf16.vlgmr.msra.gmra.mxu1 %v272_v30 }
  0x30   : > { %1732 = vmatprep.mubr.msk.f32.mxu1 %vm544_vm0, %v1570_v31 }
  0x34   : > { %476 = vmatmul.mubr.bf16.gmra.mxu0 %v272_v30 }
  0x35   : > { %1746 = vmatprep.mubr.msk.f32.mxu0 %vm544_vm0, %v535_v32 }
  0xec   : > { %v467_v33 = vpop.f32.mrf.mxu0 }
  0xee   : > { %v469_v34 = vpop.f32.mrf.mxu0 }
  0xef   : > { %v1722_v40 = vpop.f32.mrf.mxu1 }
  0xf0   : > { %v471_v35 = vpop.f32.mrf.mxu0 }
  0xf1   : > { %v520_v42 = vpop.f32.mrf.mxu1 }
  0xf2   : > { %v473_v36 = vpop.f32.mrf.mxu0 }
  0xf3   : > { %v1723_v47 = vpop.f32.mrf.mxu1 }
  0xf4   : > { %v477_v37 = vpop.f32.mrf.mxu0 }
  0xf5   : > { %v523_v53 = vpop.f32.mrf.mxu1 }
  0xf6   : > { %v479_v38 = vpop.f32.mrf.mxu0 }
  0xf8   : > { %v481_v39 = vpop.f32.mrf.mxu0 }
  0xf9   : > { %1738 = vmatprep.subr.mxu0 %v481_v39 }
  0xfa   : > { %v483_v41 = vpop.f32.mrf.mxu0  ;;  %1739 = vmatpush3.msra.mxu0 %v481_v39  ;;  %v1109_v39 = vld [vmem:[%s2230_s3] sm:$0xff] }
  0xfb   : > { %1724 = vmatprep.subr.mxu1 %v483_v41  ;;  %1740 = vmatprep.subr.mxu0 %v477_v37 }
  0xfc   : > { %1725 = vmatpush3.msra.mxu1 %v483_v41  ;;  %1741 = vmatpush3.msra.mxu0 %v477_v37 }
  0xfd   : > { %1726 = vmatprep.subr.mxu1 %v479_v38  ;;  %1742 = vmatprep.subr.mxu0 %v471_v35 }
  0xfe   : > { %1727 = vmatpush3.msra.mxu1 %v479_v38  ;;  %1743 = vmatpush3.msra.mxu0 %v471_v35  ;;  %v1614_v38 = vld [vmem:[%s2230_s3 + $0x20] sm:$0xff] }
  0xff   : > { %1728 = vmatprep.subr.mxu1 %v473_v36  ;;  %1744 = vmatprep.subr.mxu0 %v467_v33 }
 0x100   : > { %1729 = vmatpush3.msra.mxu1 %v473_v36  ;;  %1745 = vmatpush3.msra.mxu0 %v467_v33 }
 0x101   : > { %1730 = vmatprep.subr.mxu1 %v469_v34  ;;  %1747 = vmatmul.mubr.msk.f32.vlgmr.msra.gmra.mxu0 %vm544_vm0, %v536_v43 }
 0x102   : > { %1731 = vmatpush3.msra.mxu1 %v469_v34  ;;  %1749 = vmatprep.mubr.msk.f32.mxu0 %vm544_vm0, %v537_v44 }
 0x103   : > { %1733 = vmatmul.mubr.msk.f32.vlgmr.msra.gmra.mxu1 %vm544_vm0, %v1571_v45  ;;  %1752 = vmatprep.subr.mxu1 %v1723_v47 }
 0x104   : > { %1753 = vmatpush3.msra.mxu1 %v1723_v47  ;;  %1735 = vmatprep.mubr.msk.f32.mxu1 %vm544_vm0, %v1572_v46 }
 0x105   : > { %1754 = vmatprep.subr.mxu1 %v1722_v40  ;;  %1750 = vmatmul.mubr.msk.f32.gmra.mxu0 %vm544_vm0, %v538_v48 }
 0x106   : > { %1755 = vmatpush3.msra.mxu1 %v1722_v40  ;;  %1007 = vmatprep.subr.bf16.mxu0 %v1871_v49  ;;  %v1110_v49 = vld [vmem:[%s2230_s3 + $0x8] sm:$0xff] }
 0x107   : > { %1736 = vmatmul.mubr.msk.f32.gmra.mxu1 %vm544_vm0, %v1573_v50  ;;  %1756 = vmatprep.subr.mxu1 %v523_v53  ;;  %v1111_v50 = vld [vmem:[%s2230_s3 + $0x10] sm:$0xff] }
 0x108   : > { %1757 = vmatpush3.msra.mxu1 %v523_v53  ;;  %1760 = vmatprep.mubr.msk.f32.mxu1 %vm544_vm0, %v1582_v51  ;;  %v1615_v51 = vld [vmem:[%s2230_s3 + $0x28] sm:$0xff] }
 0x109   : > { %1758 = vmatprep.subr.mxu1 %v520_v42  ;;  %1008 = vmatpush1.bf16.msra.mxu0 %v1869_v52  ;;  %v1616_v52 = vld [vmem:[%s2230_s3 + $0x30] sm:$0xff] }
 0x10a   : > { %1759 = vmatpush3.msra.mxu1 %v520_v42  ;;  %1009 = vmatprep.subr.bf16.mxu0 %v1874_v54  ;;  %v1112_v54 = vld [vmem:[%s2230_s3 + $0x18] sm:$0xff] }
 0x10b   : > { %1761 = vmatmul.mubr.msk.f32.vlgmr.msra.gmra.mxu1 %vm544_vm0, %v1583_v56  ;;  %1766 = vmatprep.subr.bf16.mxu1 %v1875_v55  ;;  %v1626_v56 = vld [vmem:[%s2230_s3 + $0x40] sm:$0xff] }
 0x10c   : > { %1763 = vmatprep.mubr.msk.f32.mxu1 %vm544_vm0, %v1584_v57  ;;  %1767 = vmatpush3.bf16.msra.mxu1 %v1875_v55  ;;  %v1617_v55 = vld [vmem:[%s2230_s3 + $0x38] sm:$0xff] }
 0x10d   : > { %1010 = vmatpush1.bf16.msra.mxu0 %v1872_v58  ;;  %1768 = vmatprep.subr.bf16.mxu1 %v1879_v59  ;;  %v1627_v58 = vld [vmem:[%s2230_s3 + $0x48] sm:$0xff] }
 0x10e   : > { %1011 = vmatprep.subr.bf16.mxu0 %v1878_v60  ;;  %1039 = vmatprep.mubr.bf16.mxu0 %v1909_v2  ;;  %v1629_v60 = vld [vmem:[%s2230_s3 + $0x58] sm:$0xff] }
 0x10f   : > { %1764 = vmatmul.mubr.msk.f32.gmra.mxu1 %vm544_vm0, %v1585_v61 }
 0x110   : > { %1769 = vmatpush3.bf16.msra.mxu1 %v1879_v59  ;;  %v1628_v59 = vld [vmem:[%s2230_s3 + $0x50] sm:$0xff] }
 0x111   : > { %1012 = vmatpush1.bf16.msra.mxu0 %v1876_v62  ;;  %1770 = vmatprep.subr.bf16.mxu1 %v1883_v63 }
 0x112   : > { %1013 = vmatprep.subr.bf16.mxu0 %v1882_v0 }
 0x114   : > { %1771 = vmatpush3.bf16.msra.mxu1 %v1883_v63 }
 0x115   : > { %1014 = vmatpush1.bf16.msra.mxu0 %v1880_v1  ;;  %1772 = vmatprep.subr.bf16.mxu1 %v1887_v3 }
 0x116   : > { %1015 = vmatprep.subr.bf16.mxu0 %v1886_v4 }
 0x118   : > { %1773 = vmatpush3.bf16.msra.mxu1 %v1887_v3 }
 0x119   : > { %1016 = vmatpush1.bf16.msra.mxu0 %v1884_v5  ;;  %1774 = vmatprep.subr.bf16.mxu1 %v1891_v7 }
 0x11a   : > { %1017 = vmatprep.subr.bf16.mxu0 %v1890_v6 }
 0x11c   : > { %1775 = vmatpush3.bf16.msra.mxu1 %v1891_v7 }
 0x11d   : > { %1018 = vmatpush1.bf16.msra.mxu0 %v1888_v8  ;;  %1776 = vmatprep.subr.bf16.mxu1 %v1895_v10 }
 0x11e   : > { %1019 = vmatprep.subr.bf16.mxu0 %v1894_v9 }
 0x120   : > { %1777 = vmatpush3.bf16.msra.mxu1 %v1895_v10 }
 0x121   : > { %1020 = vmatpush1.bf16.msra.mxu0 %v1892_v11  ;;  %1778 = vmatprep.subr.bf16.mxu1 %v1899_v13 }
 0x122   : > { %1021 = vmatprep.subr.bf16.mxu0 %v1898_v12 }
 0x124   : > { %1779 = vmatpush3.bf16.msra.mxu1 %v1899_v13 }
 0x125   : > { %1022 = vmatpush1.bf16.msra.mxu0 %v1896_v14  ;;  %1780 = vmatprep.subr.bf16.mxu1 %v1900_v15 }
 0x128   : > { %1781 = vmatpush3.bf16.msra.mxu1 %v1900_v15 }
 0x1c1   : > { %v1748_v16 = vpop.f32.mrf.mxu0 }
 0x1c3   : > { %v1734_v17 = vpop.f32.mrf.mxu1  ;;  %v720_v19 = vpop.f32.mrf.mxu0 }
 0x1c4   : > { %v726_v24 = vadd.f32 %v1748_v16, %v1734_v17 }
 0x1c5   : > { %v623_v18 = vpop.f32.mrf.mxu1  ;;  %v1751_v21 = vpop.f32.mrf.mxu0 }
 0x1c6   : > { %v721_v25 = vadd.f32 %v720_v19, %v623_v18 }
 0x1c7   : > { %v1737_v20 = vpop.f32.mrf.mxu1  ;;  %v730_v26 = vpop.f32.mrf.mxu0 }
 0x1c8   : > { %v736_v31 = vadd.f32 %v1751_v21, %v1737_v20 }
 0x1c9   : > { %v633_v22 = vpop.f32.mrf.mxu1 }
 0x1ca   : > { %v731_v32 = vadd.f32 %v730_v26, %v633_v22 }
 0x1cb   : > { %v1762_v23 = vpop.f32.mrf.mxu1 }
 0x1cc   : > { %v842_v28 = vadd.f32 %v1762_v23, %v726_v24 }
 0x1cd   : > { %v822_v27 = vpop.f32.mrf.mxu1 }
 0x1ce   : > { %v841_v29 = vadd.f32 %v822_v27, %v721_v25 }
 0x1cf   : > { %v1765_v30 = vpop.f32.mrf.mxu1 }
 0x1d0   : > { %v845_v33 = vpack.c.bf16 %v842_v28, %v841_v29  ;;  %v844_v35 = vadd.f32 %v1765_v30, %v736_v31 }
 0x1d1   : > { %v832_v34 = vpop.f32.mrf.mxu1 }
 0x1d2   : > { %v843_v36 = vadd.f32 %v832_v34, %v731_v32  ;;  %1040 = vmatmul.mubr.bf16.vlgmr.msra.gmra.mxu0 %v845_v33  ;;  %1782 = vmatprep.mubr.bf16.mxu1 %v845_v33 }
 0x1d3   : > { %1049 = vmatprep.mubr.bf16.mxu0 %v1909_v2 }
 0x1d4   : > { %v846_v37 = vpack.c.bf16 %v844_v35, %v843_v36 }
 0x1d6   : > { %1783 = vmatmul.mubr.bf16.vlgmr.msra.gmra.mxu1 %v846_v37 }
 0x1d7   : > { %1794 = vmatprep.mubr.msk.f32.mxu1 %vm544_vm0, %v1614_v38 }
 0x1da   : > { %1050 = vmatmul.mubr.bf16.gmra.mxu0 %v846_v37 }
 0x1db   : > { %1808 = vmatprep.mubr.msk.f32.mxu0 %vm544_vm0, %v1109_v39 }
 0x292   : > { %v1041_v40 = vpop.f32.mrf.mxu0 }
 0x294   : > { %v1043_v41 = vpop.f32.mrf.mxu0 }
 0x296   : > { %v1045_v42 = vpop.f32.mrf.mxu0  ;;  %v1784_v46 = vpop.f32.mrf.mxu1 }
 0x298   : > { %v1047_v43 = vpop.f32.mrf.mxu0  ;;  %v1094_v48 = vpop.f32.mrf.mxu1 }
 0x29a   : > { %v1051_v2 = vpop.f32.mrf.mxu0  ;;  %v1785_v53 = vpop.f32.mrf.mxu1 }
 0x29c   : > { %v1053_v44 = vpop.f32.mrf.mxu0  ;;  %v1097_v57 = vpop.f32.mrf.mxu1 }
 0x29e   : > { %v1055_v45 = vpop.f32.mrf.mxu0 }
 0x29f   : > { %1800 = vmatprep.subr.mxu0 %v1055_v45 }
 0x2a0   : > { %v1057_v47 = vpop.f32.mrf.mxu0  ;;  %1801 = vmatpush3.msra.mxu0 %v1055_v45 }
 0x2a1   : > { %1786 = vmatprep.subr.mxu1 %v1057_v47  ;;  %1802 = vmatprep.subr.mxu0 %v1051_v2 }
 0x2a2   : > { %1787 = vmatpush3.msra.mxu1 %v1057_v47  ;;  %1803 = vmatpush3.msra.mxu0 %v1051_v2 }
 0x2a3   : > { %1788 = vmatprep.subr.mxu1 %v1053_v44  ;;  %1804 = vmatprep.subr.mxu0 %v1045_v42 }
 0x2a4   : > { %1789 = vmatpush3.msra.mxu1 %v1053_v44  ;;  %1805 = vmatpush3.msra.mxu0 %v1045_v42 }
 0x2a5   : > { %1790 = vmatprep.subr.mxu1 %v1047_v43  ;;  %1806 = vmatprep.subr.mxu0 %v1041_v40 }
 0x2a6   : > { %1791 = vmatpush3.msra.mxu1 %v1047_v43  ;;  %1807 = vmatpush3.msra.mxu0 %v1041_v40 }
 0x2a7   : > { %1792 = vmatprep.subr.mxu1 %v1043_v41  ;;  %1809 = vmatmul.mubr.msk.f32.vlgmr.msra.gmra.mxu0 %vm544_vm0, %v1110_v49 }
 0x2a8   : > { %1793 = vmatpush3.msra.mxu1 %v1043_v41  ;;  %1811 = vmatprep.mubr.msk.f32.mxu0 %vm544_vm0, %v1111_v50 }
 0x2a9   : > { %1795 = vmatmul.mubr.msk.f32.vlgmr.msra.gmra.mxu1 %vm544_vm0, %v1615_v51  ;;  %1814 = vmatprep.subr.mxu1 %v1785_v53 }
 0x2aa   : > { %1815 = vmatpush3.msra.mxu1 %v1785_v53  ;;  %1797 = vmatprep.mubr.msk.f32.mxu1 %vm544_vm0, %v1616_v52 }
 0x2ab   : > { %1816 = vmatprep.subr.mxu1 %v1784_v46  ;;  %1812 = vmatmul.mubr.msk.f32.gmra.mxu0 %vm544_vm0, %v1112_v54 }
 0x2ac   : > { %1817 = vmatpush3.msra.mxu1 %v1784_v46 }
 0x2ad   : > { %1798 = vmatmul.mubr.msk.f32.gmra.mxu1 %vm544_vm0, %v1617_v55  ;;  %1818 = vmatprep.subr.mxu1 %v1097_v57 }
 0x2ae   : > { %1819 = vmatpush3.msra.mxu1 %v1097_v57  ;;  %1822 = vmatprep.mubr.msk.f32.mxu1 %vm544_vm0, %v1626_v56 }
 0x2af   : > { %1820 = vmatprep.subr.mxu1 %v1094_v48 }
 0x2b0   : > { %1821 = vmatpush3.msra.mxu1 %v1094_v48 }
 0x2b1   : > { %1823 = vmatmul.mubr.msk.f32.vlgmr.msra.gmra.mxu1 %vm544_vm0, %v1627_v58 }
 0x2b2   : > { %1825 = vmatprep.mubr.msk.f32.mxu1 %vm544_vm0, %v1628_v59 }
 0x2b5   : > { %1826 = vmatmul.mubr.msk.f32.gmra.mxu1 %vm544_vm0, %v1629_v60 }
 0x367   : > { %v1810_v61 = vpop.f32.mrf.mxu0 }
 0x369   : > { %v1796_v62 = vpop.f32.mrf.mxu1  ;;  %v1293_v0 = vpop.f32.mrf.mxu0 }
 0x36a   : > { %v1299_v6 = vadd.f32 %v1810_v61, %v1796_v62 }
 0x36b   : > { %v1196_v63 = vpop.f32.mrf.mxu1  ;;  %v1813_v3 = vpop.f32.mrf.mxu0 }
 0x36c   : > { %v1294_v7 = vadd.f32 %v1293_v0, %v1196_v63 }
 0x36d   : > { %v1799_v1 = vpop.f32.mrf.mxu1  ;;  %v1303_v8 = vpop.f32.mrf.mxu0 }
 0x36e   : > { %v1309_v13 = vadd.f32 %v1813_v3, %v1799_v1 }
 0x36f   : > { %v1206_v4 = vpop.f32.mrf.mxu1 }
 0x370   : > { %v1304_v14 = vadd.f32 %v1303_v8, %v1206_v4 }
 0x371   : > { %v1824_v5 = vpop.f32.mrf.mxu1 }
 0x372   : > { %v1415_v10 = vadd.f32 %v1824_v5, %v1299_v6 }
 0x373   : > { %v1395_v9 = vpop.f32.mrf.mxu1 }
 0x374   : > { %v1414_v11 = vadd.f32 %v1395_v9, %v1294_v7  ;;  %1419 = vst [vmem:[%s260_s10 + $0x8] sm:$0xff] %v1415_v10  ;;  %v1432_v17 = vmul.f32 %v1415_v10, %v1415_v10 }
 0x375   : > { %v1827_v12 = vpop.f32.mrf.mxu1 }
 0x376   : > { %1418 = vst [vmem:[%s260_s10] sm:$0xff] %v1414_v11  ;;  %v1431_v15 = vmul.f32 %v1414_v11, %v1414_v11  ;;  %v1422_v18 = vadd.f32 %v1415_v10, %v1414_v11  ;;  %v1417_v19 = vadd.f32 %v1827_v12, %v1309_v13 }
 0x377   : > { %v1405_v16 = vpop.f32.mrf.mxu1 }
 0x378   : > { %v1416_v20 = vadd.f32 %v1405_v16, %v1304_v14  ;;  %v1435_v21 = vadd.f32 %v1432_v17, %v1431_v15  ;;  %1421 = vst [vmem:[%s260_s10 + $0x18] sm:$0xff] %v1417_v19  ;;  %v1434_v24 = vmul.f32 %v1417_v19, %v1417_v19 }
 0x37a   : > { %1420 = vst [vmem:[%s260_s10 + $0x10] sm:$0xff] %v1416_v20  ;;  %v1423_v22 = vadd.f32 %v1422_v18, %v1416_v20  ;;  %v1433_v23 = vmul.f32 %v1416_v20, %v1416_v20 }
 0x37c   : > { %v1424_v25 = vadd.f32 %v1423_v22, %v1417_v19  ;;  %v1436_v26 = vadd.f32 %v1435_v21, %v1433_v23 }
 0x37e   : > { %v1425_v27 = vrot.slane %v1424_v25, 4  ;;  %v1437_v28 = vadd.f32 %v1436_v26, %v1434_v24 }
 0x380   : > { %v1426_v29 = vadd.f32 %v1425_v27, %v1424_v25  ;;  %v1438_v30 = vrot.slane %v1437_v28, 4 }
 0x382   : > { %v1427_v31 = vrot.slane %v1426_v29, 2  ;;  %v1439_v32 = vadd.f32 %v1438_v30, %v1437_v28 }
 0x384   : > { %v1428_v33 = vadd.f32 %v1427_v31, %v1426_v29  ;;  %v1440_v34 = vrot.slane %v1439_v32, 2 }
 0x386   : > { %v1429_v35 = vrot.slane %v1428_v33, 1  ;;  %v1441_v36 = vadd.f32 %v1440_v34, %v1439_v32 }
 0x388   : > { %v1442_v37 = vrot.slane %v1441_v36, 1  ;;  %v1430_v38 = vadd.f32 %v1429_v35, %v1428_v33 }
 0x38a   : > { %v1443_v39 = vadd.f32 %v1442_v37, %v1441_v36 }
 0x38c   : > { %v1445_v40 = vsel %vm1444_vm1, %v1430_v38, %v1443_v39 }
 0x38d   : > { %v1447_v41 = vsel %vm1446_vm2, %v1445_v40, 0.0 }
 0x38e   : > { %1448 = vst [vmem:[%s265_s12] sm:$0xff] %v1447_v41 }
 0x38f PF: > { %s17_s21 = sadd.s32 1, %s1907_s21  }
 0x390   : > { %p14_p5 = scmp.ge.s32.totalorder %s17_s21, 4  }
 0x392   :  { %16 = sbr.rel (!%p14_p5) target bundleno = 1 (0x1), region = 86 }

</bundles_post_ra>
